<compile_context>
chip_gen: v6e
topology: v6e:2x2x1
jax: 0.10.0
libtpu: 0.0.40
codegen_flags: <defaults>
</compile_context>

<pallas_src>
import functools
from typing import Tuple

import jax
import jax.numpy as jnp
from jax.experimental import pallas as pl
from jax.experimental.pallas import tpu as pltpu

_LANE = 128
_SUBLANE = 8


def _round_up(x: int, m: int) -> int:
    return (x + m - 1) // m * m


def _mlp_kernel(*refs, n_layers: int):
    """refs = (x_ref, w0, b0, w1, b1, ..., o_ref). Whole MLP for one batch tile."""
    x_ref = refs[0]
    o_ref = refs[-1]
    wb_refs = refs[1:-1]

    h = x_ref[...]
    for i in range(n_layers):                      # static unroll over layers
        w = wb_refs[2 * i][...]
        b = wb_refs[2 * i + 1][...]
        h = jnp.dot(h.astype(w.dtype), w, preferred_element_type=jnp.float32)
        h = h + b.astype(jnp.float32)              # (tm, Dout) + (1, Dout) broadcast
        if i < n_layers - 1:
            h = jnp.tanh(h)                        # EUP transcendental, f32
    o_ref[...] = h.astype(o_ref.dtype)


def mlp_forward(x: jax.Array, params, *, compute_dtype=jnp.float32,
                block_m: int = 256) -> jax.Array:
    """Fused MLP forward. params = [(w_i (Din,Dout), b_i (1,Dout)), ...]."""
    B, D_in = x.shape
    n_layers = len(params)
    assert n_layers >= 1
    assert params[0][0].shape[0] == D_in

    dims = [D_in] + [w.shape[1] for (w, _) in params]
    pdims = [_round_up(d, _LANE) for d in dims]    # lane-dense feature dims

    tm = min(_round_up(B, _SUBLANE), block_m)      # batch tile (multiple of 8)
    B_pad = _round_up(B, tm)
    nb = B_pad // tm

    # --- zero-pad operands (zeros are inert through matmul / bias / tanh) ---
    xp = jnp.zeros((B_pad, pdims[0]), compute_dtype).at[:B, :D_in].set(
        x.astype(compute_dtype))
    padded = []
    for i, (w, b) in enumerate(params):
        wp = jnp.zeros((pdims[i], pdims[i + 1]), compute_dtype)
        wp = wp.at[:dims[i], :dims[i + 1]].set(w.astype(compute_dtype))
        bp = jnp.zeros((1, pdims[i + 1]), jnp.float32)
        bp = bp.at[:, :dims[i + 1]].set(b.astype(jnp.float32).reshape(1, -1))
        padded += [wp, bp]

    # --- block specs ---
    in_specs = [pl.BlockSpec((tm, pdims[0]), lambda i: (i, 0))]
    for li in range(n_layers):
        # Weights/biases: whole (padded) array as one block, constant index ->
        # DMA'd once and resident in VMEM across all batch tiles.
        in_specs.append(pl.BlockSpec((pdims[li], pdims[li + 1]), lambda i: (0, 0)))
        in_specs.append(pl.BlockSpec((1, pdims[li + 1]), lambda i: (0, 0)))
    out_spec = pl.BlockSpec((tm, pdims[-1]), lambda i: (i, 0))

    # --- cost estimate (helps XLA schedule the custom call) ---
    bpe = jnp.dtype(compute_dtype).itemsize
    flops = sum(2 * B_pad * pdims[i] * pdims[i + 1] for i in range(n_layers))
    transcendentals = sum(B_pad * pdims[i + 1] for i in range(n_layers - 1))
    bytes_accessed = (xp.size * bpe
                      + sum(p.size * p.dtype.itemsize for p in padded)
                      + B_pad * pdims[-1] * jnp.dtype(x.dtype).itemsize)
    cost = pl.CostEstimate(flops=flops, transcendentals=transcendentals,
                           bytes_accessed=bytes_accessed)

    # --- VMEM budget: resident weights + double-buffered I/O tiles + working
    #     set; cap at 48 MiB so it stays inside v7x's 64 MiB physical VMEM. ---
    weight_bytes = sum(p.size * p.dtype.itemsize for p in padded)
    io_bytes = 2 * tm * pdims[0] * bpe + 2 * tm * pdims[-1] * jnp.dtype(x.dtype).itemsize
    work_bytes = 2 * tm * max(pdims) * 4
    vmem_limit = int(min(48 * 2**20,
                         max(16 * 2**20,
                             1.5 * (weight_bytes + io_bytes + work_bytes))))

    out_pad = pl.pallas_call(
        functools.partial(_mlp_kernel, n_layers=n_layers),
        out_shape=jax.ShapeDtypeStruct((B_pad, pdims[-1]), x.dtype),
        grid=(nb,),
        in_specs=in_specs,
        out_specs=out_spec,
        compiler_params=pltpu.CompilerParams(
            dimension_semantics=("parallel",),     # shard batch tiles across TCs
            vmem_limit_bytes=vmem_limit,
        ),
        cost_estimate=cost,
    )(xp, *padded)

    return out_pad[:B, :dims[-1]]


def init_mlp_params(key: jax.Array, sizes: Tuple[int, ...], bias: bool = True):
    """Mimics nn.Linear init shapes: w (d_in, d_out) [= W^T], b (1, d_out)."""
    params = []
    for i in range(len(sizes) - 1):
        d_in, d_out = sizes[i], sizes[i + 1]
        key, wk, bk = jax.random.split(key, 3)
        bound = 1.0 / jnp.sqrt(jnp.float32(d_in))
        w = jax.random.uniform(wk, (d_in, d_out), jnp.float32, -bound, bound)
        if bias:
            b = jax.random.uniform(bk, (1, d_out), jnp.float32, -bound, bound)
        else:
            b = jnp.zeros((1, d_out), jnp.float32)
        params.append((w, b))
    return params


def mlp_reference(x: jax.Array, params) -> jax.Array:
    n = len(params)
    h = x
    for i, (w, b) in enumerate(params):
        h = h @ w + b
        if i < n - 1:
            h = jnp.tanh(h)
    return h


if __name__ == "__main__":
    # MLP(sizes): Linear(32,64) -> Tanh -> Linear(64,16)
    sizes = (32, 64, 16)
    batch = 8

    key = jax.random.PRNGKey(0)
    key, xk = jax.random.split(key)
    x = jax.random.normal(xk, (batch, sizes[0]), jnp.float32)
    params = init_mlp_params(key, sizes, bias=True)

    out = mlp_forward(x, params)                 # single fused pallas_call
    out = jax.block_until_ready(out)

    ref = mlp_reference(x, params)
    assert out.shape == (batch, sizes[-1])
    assert jnp.allclose(out, ref, atol=1e-5, rtol=1e-5), "mismatch vs reference"

    print("KERNEL_OK")
</pallas_src>

<mosaic_0001>
module attributes {stable_mosaic.version = 11 : i64} {
  func.func @_mlp_kernel(%arg0: i32, %arg1: memref<8x128xf32, #tpu.memory_space<vmem>>, %arg2: memref<128x128xf32, #tpu.memory_space<vmem>>, %arg3: memref<1x128xf32, #tpu.memory_space<vmem>>, %arg4: memref<128x128xf32, #tpu.memory_space<vmem>>, %arg5: memref<1x128xf32, #tpu.memory_space<vmem>>, %arg6: memref<8x128xf32, #tpu.memory_space<vmem>>) attributes {dimension_semantics = [#tpu.dimension_semantics<parallel>], iteration_bounds = array<i64: 1>, scalar_prefetch = 0 : i64, scratch_operands = 0 : i64, tpu.core_type = #tpu.core_type<tc>, window_params = [{transform_indices = @transform_0, window_bounds = array<i64: 8, 128>}, {pipeline_mode = #tpu.pipeline_mode<synchronous>, transform_indices = @transform_1, window_bounds = array<i64: 128, 128>}, {pipeline_mode = #tpu.pipeline_mode<synchronous>, transform_indices = @transform_2, window_bounds = array<i64: 1, 128>}, {pipeline_mode = #tpu.pipeline_mode<synchronous>, transform_indices = @transform_3, window_bounds = array<i64: 128, 128>}, {pipeline_mode = #tpu.pipeline_mode<synchronous>, transform_indices = @transform_4, window_bounds = array<i64: 1, 128>}, {transform_indices = @transform_5, window_bounds = array<i64: 8, 128>}]} {
    %c0 = arith.constant 0 : index
    %c0_0 = arith.constant 0 : index
    %0 = vector.load %arg1[%c0, %c0_0] : memref<8x128xf32, #tpu.memory_space<vmem>>, vector<8x128xf32>
    %c0_1 = arith.constant 0 : index
    %c0_2 = arith.constant 0 : index
    %1 = vector.load %arg2[%c0_1, %c0_2] : memref<128x128xf32, #tpu.memory_space<vmem>>, vector<128x128xf32>
    %c0_3 = arith.constant 0 : index
    %c0_4 = arith.constant 0 : index
    %2 = vector.load %arg3[%c0_3, %c0_4] : memref<1x128xf32, #tpu.memory_space<vmem>>, vector<1x128xf32>
    %cst = arith.constant dense<0.000000e+00> : vector<8x128xf32>
    %3 = tpu.matmul %0, %1, %cst {dimension_numbers = #tpu.dot_dimension_numbers<[1], [0], [0], [1], [0, 0, 1, 1], [], []>} : vector<8x128xf32>, vector<128x128xf32>, vector<8x128xf32> -> vector<8x128xf32>
    %4 = vector.broadcast %2 : vector<1x128xf32> to vector<8x128xf32>
    %5 = arith.addf %3, %4 : vector<8x128xf32>
    %6 = math.tanh %5 : vector<8x128xf32>
    %c0_5 = arith.constant 0 : index
    %c0_6 = arith.constant 0 : index
    %7 = vector.load %arg4[%c0_5, %c0_6] : memref<128x128xf32, #tpu.memory_space<vmem>>, vector<128x128xf32>
    %c0_7 = arith.constant 0 : index
    %c0_8 = arith.constant 0 : index
    %8 = vector.load %arg5[%c0_7, %c0_8] : memref<1x128xf32, #tpu.memory_space<vmem>>, vector<1x128xf32>
    %cst_9 = arith.constant dense<0.000000e+00> : vector<8x128xf32>
    %9 = tpu.matmul %6, %7, %cst_9 {dimension_numbers = #tpu.dot_dimension_numbers<[1], [0], [0], [1], [0, 0, 1, 1], [], []>} : vector<8x128xf32>, vector<128x128xf32>, vector<8x128xf32> -> vector<8x128xf32>
    %10 = vector.broadcast %8 : vector<1x128xf32> to vector<8x128xf32>
    %11 = arith.addf %9, %10 : vector<8x128xf32>
    %c0_10 = arith.constant 0 : index
    %c0_11 = arith.constant 0 : index
    %12 = vector.load %arg6[%c0_10, %c0_11] : memref<8x128xf32, #tpu.memory_space<vmem>>, vector<8x128xf32>
    tpu.vector_store %arg6[%c0_10, %c0_11], %11 {strides = array<i32>} : memref<8x128xf32, #tpu.memory_space<vmem>>, vector<8x128xf32>,
    return
  }
  func.func @transform_0(%arg0: i32) -> (i32, i32) {
    %c0_i32 = arith.constant 0 : i32
    %c0_i32_0 = arith.constant 0 : i32
    return %arg0, %c0_i32 : i32, i32
  }
  func.func @transform_1(%arg0: i32) -> (i32, i32) {
    %c0_i32 = arith.constant 0 : i32
    %c0_i32_0 = arith.constant 0 : i32
    %c0_i32_1 = arith.constant 0 : i32
    return %c0_i32, %c0_i32_0 : i32, i32
  }
  func.func @transform_2(%arg0: i32) -> (i32, i32) {
    %c0_i32 = arith.constant 0 : i32
    %c0_i32_0 = arith.constant 0 : i32
    %c0_i32_1 = arith.constant 0 : i32
    return %c0_i32, %c0_i32_0 : i32, i32
  }
  func.func @transform_3(%arg0: i32) -> (i32, i32) {
    %c0_i32 = arith.constant 0 : i32
    %c0_i32_0 = arith.constant 0 : i32
    %c0_i32_1 = arith.constant 0 : i32
    return %c0_i32, %c0_i32_0 : i32, i32
  }
  func.func @transform_4(%arg0: i32) -> (i32, i32) {
    %c0_i32 = arith.constant 0 : i32
    %c0_i32_0 = arith.constant 0 : i32
    %c0_i32_1 = arith.constant 0 : i32
    return %c0_i32, %c0_i32_0 : i32, i32
  }
  func.func @transform_5(%arg0: i32) -> (i32, i32) {
    %c0_i32 = arith.constant 0 : i32
    %c0_i32_0 = arith.constant 0 : i32
    return %arg0, %c0_i32 : i32, i32
  }
}

</mosaic_0001>

<bundles_post_ra>
// kernel: tpu_custom_call.1
= control target key start
LH: loop header
LB: loop body
LE: loop exit
PB: predicated region body
PF: predicated region fallthrough
CT: control target
= control target key end

     0   :  { %10 = vsyncpa [#allocation3], 0  ;;  %s557_s0 = inlined_call_operand.hbm [shape: f32[8,128], index: 0, kind: input, shape index: {}]   ;;  %s558_s1 = inlined_call_operand.hbm [shape: f32[128,128], index: 1, kind: input, shape index: {}]   ;;  %s559_s2 = inlined_call_operand.vmem [shape: f32[1,128], index: 2, kind: input, shape index: {}]   ;;  %s560_s3 = inlined_call_operand.hbm [shape: f32[128,128], index: 3, kind: input, shape index: {}]   ;;  %s561_s4 = inlined_call_operand.vmem [shape: f32[1,128], index: 4, kind: input, shape index: {}]   ;;  %s562_s5 = inlined_call_operand.hbm [shape: f32[8,128], index: 5, kind: output, shape index: {}]  }
   0x1   :  { %11 = vsyncpa [#allocation6], 0 }
   0x2   :  { %12 = vsyncpa [#allocation4], 0  ;;  %s467_s18 = smov [#allocation5]  }
   0x3   :  { %s28_s19 = sshll.u32 %s467_s18, 4  ;;  %s29_s19 = int_to_ptr.vmem [resolvable:$true] %s28_s19 }
   0x4   :  { %s389_s20 = scalar_lea.vmem %s29_s19, 2048  ;;  %p394_p1 = scmp.lt.s32.totalorder %s29_s19, %s29_s19 }
   0x5   :  { %p390_p0 = scmp.ne.s32.totalorder %s29_s19, %s389_s20  ;;  %p395_p2 = scmp.lt.s32.totalorder %s389_s20, %s389_s20 }
   0x7   :  { %p396_p3 = por %p395_p2, %p394_p1 }
   0x9   :  { %p397_p4 = pnand %p396_p3, %p390_p0 }
   0xb   :  { %400 = shalt.err (!%p397_p4)
}
   0xc   :  { %s468_s21 = smov 128   ;;  %s469_s22 = smov 8  }
   0xd   :  { %34 = dma.hbm_to_vmem [thread:$0]  %s558_s1, 2048, %s29_s19, [#allocation6], %s468_s21, %s468_s21, %s469_s22  }
   0xe   :  { %s470_s25 = smov [#allocation2]   ;;  %s471_s27 = smov [#allocation7]  }
   0xf   :  { %s19_s26 = sshll.u32 %s470_s25, 4  ;;  %s42_s28 = sshll.u32 %s471_s27, 4  ;;  %s20_s26 = int_to_ptr.vmem [resolvable:$true] %s19_s26  ;;  %s43_s28 = int_to_ptr.vmem [resolvable:$true] %s42_s28 }
  0x10   :  { %s409_s29 = scalar_lea.vmem %s20_s26, 128  ;;  %p414_p6 = scmp.lt.s32.totalorder %s20_s26, %s20_s26 }
  0x11   :  { %p410_p5 = scmp.ne.s32.totalorder %s20_s26, %s409_s29  ;;  %p415_p7 = scmp.lt.s32.totalorder %s409_s29, %s409_s29 }
  0x13   :  { %p416_p8 = por %p415_p7, %p414_p6 }
  0x15   :  { %p417_p9 = pnand %p416_p8, %p410_p5 }
  0x17   :  { %420 = shalt.err (!%p417_p9)
}
  0x18   :  { %22 = dma.hbm_to_vmem [thread:$0]  %s557_s0, 128, %s20_s26, [#allocation3]  }
  0x19   :  { %s429_s7 = scalar_lea.vmem %s43_s28, 2048  ;;  %p434_p11 = scmp.lt.s32.totalorder %s43_s28, %s43_s28 }
  0x1a   :  { %p430_p10 = scmp.ne.s32.totalorder %s43_s28, %s429_s7  ;;  %p435_p12 = scmp.lt.s32.totalorder %s429_s7, %s429_s7 }
  0x1c   :  { %p436_p13 = por %p435_p12, %p434_p11 }
  0x1e   :  { %p437_p0 = pnand %p436_p13, %p430_p10 }
  0x20   :  { %440 = shalt.err (!%p437_p0)
}
  0x21   :  { %48 = dma.hbm_to_vmem [thread:$0]  %s560_s3, 2048, %s43_s28, [#allocation6], %s468_s21, %s468_s21, %s469_s22  }
  0x22   :  { %461 = dma.done.wait [#allocation3], 128  }
  0x23   :  { %462 = vsyncadd [#allocation3], 4294967168 }
  0x24   :  { %463 = dma.done.wait [#allocation6], 4096  }
  0x25   :  { %464 = vsyncadd [#allocation6], 4294963200  ;;  %v472_v0 = vmov 0.0   ;;  %vm473_vm0 = vmmov 0   ;;  %v76_v1 = vld [vmem:[#allocation5 + $0x78] sm:$0xff]  ;;  %v75_v2 = vld [vmem:[#allocation5 + $0x70] sm:$0xff] }
  0x26   :  { %301 = vmatprep.subr.mxu0 %v472_v0  ;;  %333 = vmatprep.mubr.msk.f32.mxu0 %vm473_vm0, %v472_v0  ;;  %v74_v3 = vld [vmem:[#allocation5 + $0x68] sm:$0xff]  ;;  %v73_v4 = vld [vmem:[#allocation5 + $0x60] sm:$0xff]  ;;  %v170_v5 = vld [vmem:[#allocation7 + $0x78] sm:$0xff]  ;;  %s474_s11 = smov [#allocation8]  }
  0x27   :  { %336 = vmatprep.subr.mxu1 %v472_v0  ;;  %368 = vmatprep.mubr.msk.f32.mxu1 %vm473_vm0, %v472_v0  ;;  %v72_v6 = vld [vmem:[#allocation5 + $0x58] sm:$0xff]  ;;  %v169_v7 = vld [vmem:[#allocation7 + $0x70] sm:$0xff]  ;;  %v168_v8 = vld [vmem:[#allocation7 + $0x68] sm:$0xff]  ;;  %s255_s12 = sshll.u32 %s474_s11, 4  ;;  %s256_s12 = int_to_ptr.vmem [resolvable:$true] %s255_s12 }
  0x28   :  { %302 = vmatpush3.msra.mxu0 %v76_v1  ;;  %337 = vmatpush3.msra.mxu1 %v170_v5  ;;  %v71_v9 = vld [vmem:[#allocation5 + $0x50] sm:$0xff]  ;;  %v167_v10 = vld [vmem:[#allocation7 + $0x60] sm:$0xff]  ;;  %v70_v11 = vld [vmem:[#allocation5 + $0x48] sm:$0xff]  ;;  %s441_s13 = scalar_lea.vmem %s256_s12, 128  ;;  %p446_p2 = scmp.lt.s32.totalorder %s256_s12, %s256_s12 }
  0x29   :  { %303 = vmatprep.subr.mxu0 %v472_v0  ;;  %338 = vmatprep.subr.mxu1 %v472_v0  ;;  %v166_v12 = vld [vmem:[#allocation7 + $0x58] sm:$0xff]  ;;  %v69_v13 = vld [vmem:[#allocation5 + $0x40] sm:$0xff]  ;;  %v165_v14 = vld [vmem:[#allocation7 + $0x50] sm:$0xff]  ;;  %p442_p1 = scmp.ne.s32.totalorder %s256_s12, %s441_s13  ;;  %p447_p3 = scmp.lt.s32.totalorder %s441_s13, %s441_s13 }
  0x2a   :  { %304 = vmatpush3.msra.mxu0 %v75_v2  ;;  %339 = vmatpush3.msra.mxu1 %v169_v7  ;;  %v68_v15 = vld [vmem:[#allocation5 + $0x38] sm:$0xff]  ;;  %v164_v16 = vld [vmem:[#allocation7 + $0x48] sm:$0xff]  ;;  %v67_v17 = vld [vmem:[#allocation5 + $0x30] sm:$0xff] }
  0x2b   :  { %305 = vmatprep.subr.mxu0 %v472_v0  ;;  %340 = vmatprep.subr.mxu1 %v472_v0  ;;  %v66_v18 = vld [vmem:[#allocation5 + $0x28] sm:$0xff]  ;;  %v65_v19 = vld [vmem:[#allocation5 + $0x20] sm:$0xff]  ;;  %v64_v20 = vld [vmem:[#allocation5 + $0x18] sm:$0xff]  ;;  %p448_p4 = por %p447_p3, %p446_p2 }
  0x2c   :  { %306 = vmatpush3.msra.mxu0 %v74_v3  ;;  %341 = vmatpush3.msra.mxu1 %v168_v8  ;;  %v63_v21 = vld [vmem:[#allocation5 + $0x10] sm:$0xff]  ;;  %v62_v22 = vld [vmem:[#allocation5 + $0x8] sm:$0xff]  ;;  %v61_v23 = vld [vmem:[#allocation5] sm:$0xff] }
  0x2d   :  { %307 = vmatprep.subr.mxu0 %v472_v0  ;;  %342 = vmatprep.subr.mxu1 %v472_v0  ;;  %v60_v24 = vld [vmem:[#allocation2] sm:$0xff]  ;;  %v163_v25 = vld [vmem:[#allocation7 + $0x40] sm:$0xff]  ;;  %v161_v27 = vld [vmem:[#allocation7 + $0x30] sm:$0xff]  ;;  %p449_p5 = pnand %p448_p4, %p442_p1 }
  0x2e   :  { %308 = vmatpush3.msra.mxu0 %v73_v4  ;;  %343 = vmatpush3.msra.mxu1 %v167_v10  ;;  %v162_v26 = vld [vmem:[#allocation7 + $0x38] sm:$0xff]  ;;  %v160_v28 = vld [vmem:[#allocation7 + $0x28] sm:$0xff]  ;;  %v159_v29 = vld [vmem:[#allocation7 + $0x20] sm:$0xff] }
  0x2f   :  { %309 = vmatprep.subr.mxu0 %v472_v0  ;;  %344 = vmatprep.subr.mxu1 %v472_v0  ;;  %v158_v30 = vld [vmem:[#allocation7 + $0x18] sm:$0xff]  ;;  %v157_v31 = vld [vmem:[#allocation7 + $0x10] sm:$0xff]  ;;  %v156_v32 = vld [vmem:[#allocation7 + $0x8] sm:$0xff] }
  0x30   :  { %310 = vmatpush3.msra.mxu0 %v72_v6  ;;  %345 = vmatpush3.msra.mxu1 %v166_v12  ;;  %v155_v33 = vld [vmem:[#allocation7] sm:$0xff]  ;;  %v265_v34 = vld [vmem:[%s559_s2] ss:$0 sm:$0xff] }
  0x31   :  { %311 = vmatprep.subr.mxu0 %v472_v0  ;;  %346 = vmatprep.subr.mxu1 %v472_v0  ;;  %v266_v39 = vld [vmem:[%s561_s4] ss:$0 sm:$0xff] }
  0x32   :  { %312 = vmatpush3.msra.mxu0 %v71_v9  ;;  %347 = vmatpush3.msra.mxu1 %v165_v14 }
  0x33   :  { %313 = vmatprep.subr.mxu0 %v472_v0  ;;  %348 = vmatprep.subr.mxu1 %v472_v0 }
  0x34   :  { %314 = vmatpush3.msra.mxu0 %v70_v11  ;;  %349 = vmatpush3.msra.mxu1 %v164_v16 }
  0x35   :  { %315 = vmatprep.subr.mxu0 %v472_v0  ;;  %350 = vmatprep.subr.mxu1 %v472_v0 }
  0x36   :  { %316 = vmatpush3.msra.mxu0 %v69_v13  ;;  %351 = vmatpush3.msra.mxu1 %v163_v25 }
  0x37   :  { %317 = vmatprep.subr.mxu0 %v472_v0  ;;  %352 = vmatprep.subr.mxu1 %v472_v0 }
  0x38   :  { %318 = vmatpush3.msra.mxu0 %v68_v15  ;;  %353 = vmatpush3.msra.mxu1 %v162_v26 }
  0x39   :  { %319 = vmatprep.subr.mxu0 %v472_v0  ;;  %354 = vmatprep.subr.mxu1 %v472_v0 }
  0x3a   :  { %320 = vmatpush3.msra.mxu0 %v67_v17  ;;  %355 = vmatpush3.msra.mxu1 %v161_v27 }
  0x3b   :  { %321 = vmatprep.subr.mxu0 %v472_v0  ;;  %356 = vmatprep.subr.mxu1 %v472_v0 }
  0x3c   :  { %322 = vmatpush3.msra.mxu0 %v66_v18  ;;  %357 = vmatpush3.msra.mxu1 %v160_v28 }
  0x3d   :  { %323 = vmatprep.subr.mxu0 %v472_v0  ;;  %358 = vmatprep.subr.mxu1 %v472_v0 }
  0x3e   :  { %324 = vmatpush3.msra.mxu0 %v65_v19  ;;  %359 = vmatpush3.msra.mxu1 %v159_v29 }
  0x3f   :  { %325 = vmatprep.subr.mxu0 %v472_v0  ;;  %360 = vmatprep.subr.mxu1 %v472_v0 }
  0x40   :  { %326 = vmatpush3.msra.mxu0 %v64_v20  ;;  %361 = vmatpush3.msra.mxu1 %v158_v30 }
  0x41   :  { %327 = vmatprep.subr.mxu0 %v472_v0  ;;  %362 = vmatprep.subr.mxu1 %v472_v0 }
  0x42   :  { %328 = vmatpush3.msra.mxu0 %v63_v21  ;;  %363 = vmatpush3.msra.mxu1 %v157_v31 }
  0x43   :  { %329 = vmatprep.subr.mxu0 %v472_v0  ;;  %364 = vmatprep.subr.mxu1 %v472_v0 }
  0x44   :  { %330 = vmatpush3.msra.mxu0 %v62_v22  ;;  %365 = vmatpush3.msra.mxu1 %v156_v32 }
  0x45   :  { %331 = vmatprep.subr.mxu0 %v472_v0  ;;  %366 = vmatprep.subr.mxu1 %v472_v0 }
  0x46   :  { %332 = vmatpush3.msra.mxu0 %v61_v23  ;;  %367 = vmatpush3.msra.mxu1 %v155_v33 }
  0x47   :  { %334 = vmatmul.mubr.f32.vlgmr.msra.gmra.mxu0 %v60_v24 }
 0x107   :  { %v150_v35 = vpop.f32.mrf.mxu0 }
 0x108   :  { %v151_v36 = vadd.f32 %v265_v34, %v150_v35 }
 0x109   :  { %v335_v37 = vpop.f32.mrf.mxu0 }
 0x10a   :  { %379 = vtanh.f32 %v151_v36 }
 0x117   :  { %v380_v38 = vpop.eup %379 }
 0x118   :  { %369 = vmatmul.mubr.f32.vlgmr.msra.gmra.mxu1 %v380_v38 }
 0x1d8   :  { %v244_v40 = vpop.f32.mrf.mxu1 }
 0x1d9   :  { %v245_v41 = vadd.f32 %v266_v39, %v244_v40 }
 0x1da   :  { %v370_v42 = vpop.f32.mrf.mxu1 }
 0x1db   :  { %248 = vst [vmem:[#allocation8] sm:$0xff] %v245_v41 }
 0x1dc   :  { %452 = shalt.err (!%p449_p5)
}
 0x1dd   :  { %258 = dma.vmem_to_hbm [thread:$0]  %s256_s12, 128, %s562_s5, [#allocation4]  }
 0x1de   :  { %465 = dma.done.wait [#allocation4], 128  }
 0x1df   :  { %466 = vsyncadd [#allocation4], 4294967168 }
 0x1e0   :  { %262 = vsyncpa [#allocation3], 1 }
 0x1e1   :  { %263 = vsyncpa [#allocation6], 1 }
 0x1e2   :  { %264 = vsyncpa [#allocation4], 1 }

</bundles_post_ra>
